<compile_context>
chip_gen: v7x
topology: tpu7x:2x2x1
jax: 0.10.0
libtpu: 0.0.40
codegen_flags: <defaults>
</compile_context>

<pallas_src>
import functools
from collections import deque

import jax
import jax.numpy as jnp
import numpy as np
from jax.experimental import pallas as pl
from jax.experimental.pallas import tpu as pltpu

TILE = 128

SRC_DICT = {
    'paper': [('paper', 'PP_cite', 'paper'),
              ('paper', 'PF_in_L0', 'field'),
              ('paper', 'PF_in_L1', 'field'),
              ('paper', 'PF_in_L2', 'field'),
              ('paper', 'rev_AP_write_first', 'author')],
    'author': [('author', 'AP_write_first', 'paper'),
               ('author', 'in', 'affiliation')],
    'field': [('field', 'FF_in', 'field'),
              ('field', 'rev_PF_in_L0', 'paper'),
              ('field', 'rev_PF_in_L1', 'paper'),
              ('field', 'rev_PF_in_L2', 'paper')],
    'affiliation': [('affiliation', 'rev_in', 'author')],
}


# ---------------------------------------------------------------------------
# Pallas kernels: gathered boolean adjacency composition
#   out[b] = ((A_slab[ia[b]] @ B_slab[ib[b]]) > 0)
# ---------------------------------------------------------------------------
def _compose_direct_kernel(ia_ref, ib_ref, a_ref, b_ref, o_ref, *, acc_dtype):
    # Whole K fits in one tile (resident-B path): no scratch, no pl.when phases.
    del ia_ref, ib_ref
    acc = jnp.dot(a_ref[...], b_ref[...], preferred_element_type=acc_dtype)
    o_ref[...] = (acc > 0).astype(o_ref.dtype)


def _compose_acc_kernel(ia_ref, ib_ref, a_ref, b_ref, o_ref, acc_ref, *, acc_dtype):
    # Large-P fallback: K tiled, accumulator in VMEM scratch.
    del ia_ref, ib_ref

    @pl.when(pl.program_id(3) == 0)
    def _init():
        acc_ref[...] = jnp.zeros_like(acc_ref)

    acc_ref[...] += jnp.dot(a_ref[...], b_ref[...],
                            preferred_element_type=acc_dtype)

    @pl.when(pl.program_id(3) == pl.num_programs(3) - 1)
    def _finish():
        # spspmm keeps only the coalesced nonzero pattern -> boolean 0/1 output.
        o_ref[...] = (acc_ref[...] > 0).astype(o_ref.dtype)


@functools.partial(jax.jit,
                   static_argnames=("tm", "tn", "tk", "acc_dtype", "vmem_limit"))
def _gathered_compose(a_slab, b_slab, ia, ib, *, tm, tn, tk, acc_dtype, vmem_limit):
    """out[b] = ((A_slab[ia[b]] @ B_slab[ib[b]]) > 0), one pallas_call."""
    _, P, _ = a_slab.shape
    Bn = ia.shape[0]
    op_dtype = a_slab.dtype
    m_grid, n_grid, k_grid = P // tm, P // tn, P // tk

    flops = 2 * Bn * P * P * P
    bytes_accessed = int(jnp.dtype(op_dtype).itemsize) * 3 * Bn * P * P

    if k_grid == 1:
        grid = (Bn, m_grid, n_grid)
        kernel = functools.partial(_compose_direct_kernel, acc_dtype=acc_dtype)
        in_specs = [
            pl.BlockSpec((None, tm, tk), lambda bi, i, j, ia_r, ib_r: (ia_r[bi], i, 0)),
            pl.BlockSpec((None, tk, tn), lambda bi, i, j, ia_r, ib_r: (ib_r[bi], 0, j)),
        ]
        out_specs = pl.BlockSpec((None, tm, tn),
                                 lambda bi, i, j, ia_r, ib_r: (bi, i, j))
        scratch = []
        dims = ("parallel", "parallel", "parallel")
    else:
        grid = (Bn, m_grid, n_grid, k_grid)
        kernel = functools.partial(_compose_acc_kernel, acc_dtype=acc_dtype)
        in_specs = [
            pl.BlockSpec((None, tm, tk),
                         lambda bi, i, j, k, ia_r, ib_r: (ia_r[bi], i, k)),
            pl.BlockSpec((None, tk, tn),
                         lambda bi, i, j, k, ia_r, ib_r: (ib_r[bi], k, j)),
        ]
        out_specs = pl.BlockSpec((None, tm, tn),
                                 lambda bi, i, j, k, ia_r, ib_r: (bi, i, j))
        scratch = [pltpu.VMEM((tm, tn), acc_dtype)]
        dims = ("parallel", "parallel", "parallel", "arbitrary")

    return pl.pallas_call(
        kernel,
        out_shape=jax.ShapeDtypeStruct((Bn, P, P), op_dtype),
        grid_spec=pltpu.PrefetchScalarGridSpec(
            num_scalar_prefetch=2,
            grid=grid,
            in_specs=in_specs,
            out_specs=out_specs,
            scratch_shapes=scratch,
        ),
        compiler_params=pltpu.CompilerParams(
            dimension_semantics=dims,
            vmem_limit_bytes=vmem_limit),
        cost_estimate=pl.CostEstimate(flops=flops, transcendentals=0,
                                      bytes_accessed=bytes_accessed),
    )(ia, ib, a_slab, b_slab)


# ---------------------------------------------------------------------------
# Per-chip planning: operand dtype, VMEM budget, tile plan
# ---------------------------------------------------------------------------
def _round_up(x, m):
    return ((max(x, 1) + m - 1) // m) * m


def _plan_tiles(nmax, itemsize, budget):
    """Pick (P, tm, tn, tk) for a P x P boolean composition, P mult. of tile."""
    P = _round_up(nmax, TILE)

    def ws(tm_, tn_, tk_):
        # double-buffered A, B, out tiles + f32/i32 dot intermediate
        return itemsize * 2 * (tm_ * tk_ + tk_ * tn_ + tm_ * tn_) + 4 * tm_ * tn_

    # Preferred: single pass over K (resident B panel, scratch-free kernel).
    tm_cand = P
    while tm_cand >= TILE:
        if P % tm_cand == 0 and ws(tm_cand, P, P) <= budget:
            return P, tm_cand, P, P
        tm_cand -= TILE

    # Fallback: square tiles + accumulator scratch over a tiled K axis; pad P
    # up to a multiple of the chosen tile so we never drop to 128-wide tiles.
    for t in (1024, 512, 256, 128):
        if ws(t, t, t) + 4 * t * t <= budget:
            return _round_up(nmax, t), t, t, t
    return P, TILE, TILE, TILE


def _compose_probe_ok(op_dtype, acc_dtype, vmem_limit):
    """Tiny end-to-end probe (compiles + checks values) for a dtype path."""
    try:
        a = jnp.ones((1, TILE, TILE), op_dtype)
        idx = jnp.zeros((1,), jnp.int32)
        out = _gathered_compose(a, a, idx, idx, tm=TILE, tn=TILE, tk=TILE,
                                acc_dtype=acc_dtype, vmem_limit=vmem_limit)
        out = jax.block_until_ready(out)
        return bool(jnp.all(out == 1))
    except Exception:
        return False


def _chip_config():
    kind = jax.devices()[0].device_kind.lower()
    if 'v7' in kind or '7x' in kind:
        # v7x: 64 MiB VMEM per TC, no int MXU path -> bf16 operands, f32 acc.
        # TODO(synk): fp8-e4m3 operands would halve DMA bytes on v7x's fp8 MXU.
        return dict(op_dtype=jnp.bfloat16, acc_dtype=jnp.float32,
                    vmem_limit=48 << 20, tile_budget=26 << 20)
    if 'v5' in kind or 'v6' in kind:
        cfg = dict(op_dtype=jnp.int8, acc_dtype=jnp.int32,
                   vmem_limit=96 << 20, tile_budget=60 << 20)
        if _compose_probe_ok(cfg['op_dtype'], cfg['acc_dtype'], cfg['vmem_limit']):
            return cfg
        # int8 path unavailable on this stack -> exact bf16 fallback.
        return dict(op_dtype=jnp.bfloat16, acc_dtype=jnp.float32,
                    vmem_limit=96 << 20, tile_budget=60 << 20)
    # Unknown chip: conservative bf16.
    return dict(op_dtype=jnp.bfloat16, acc_dtype=jnp.float32,
                vmem_limit=32 << 20, tile_budget=20 << 20)


# ---------------------------------------------------------------------------
# Meta-path enumeration (host glue, identical to the reference BFS)
# ---------------------------------------------------------------------------
def enumerate_meta_paths(node_types, k):
    queue = deque([(nt, []) for nt in node_types])
    result = []
    while queue:
        node_type, hist = queue.popleft()
        if len(hist) == k:
            result.append(hist)
            continue
        for edge_type in SRC_DICT[node_type]:
            queue.append((edge_type[2], hist + [edge_type]))
    return result


# ---------------------------------------------------------------------------
# Module
# ---------------------------------------------------------------------------
class KHopAugmentation:
    def __init__(self, num_heads, num_layers, num_spatial_types, key):
        self.num_heads = num_heads
        self.num_layers = num_layers
        self.num_spatial_types = num_spatial_types
        # nn.Embedding(num_layers * num_spatial_types, num_heads), normal std=0.02.
        # TODO(synk): the reference defines this embedding (and a multiprocessing
        # Pool) but never uses them in forward(); kept only for parameter parity.
        self.spatial_encoder_weight = 0.02 * jax.random.normal(
            key, (num_layers * num_spatial_types, num_heads), dtype=jnp.float32)
        self._cfg = _chip_config()

    def forward(self, adj_dict, num_nodes_dict):
        paths = enumerate_meta_paths(list(num_nodes_dict.keys()),
                                     self.num_spatial_types)
        if not paths:
            return {}

        cfg = self._cfg
        op_dtype, acc_dtype = cfg['op_dtype'], cfg['acc_dtype']
        itemsize = jnp.dtype(op_dtype).itemsize
        nmax = max(num_nodes_dict.values())
        P, tm, tn, tk = _plan_tiles(nmax, itemsize, cfg['tile_budget'])

        # Base adjacencies, padded once to a common (P, P) square, in one slab.
        used_edges = sorted({et for path in paths for et in path})
        base_index = {et: i for i, et in enumerate(used_edges)}
        base_slab = jnp.stack([
            jnp.pad(adj_dict[et].astype(op_dtype),
                    ((0, P - adj_dict[et].shape[0]),
                     (0, P - adj_dict[et].shape[1])))
            for et in used_edges])

        # Level-by-level composition.  At level L: A = level-(L-1) slab entry,
        # B = base slab entry, both gathered inside the kernel via scalar
        # prefetch indices (no host-side stacking, shared B deduped).
        prev_slab = base_slab
        prev_slot = {(et,): base_index[et] for et in used_edges}
        max_len = max(len(p) for p in paths)
        for level in range(2, max_len + 1):
            need, seen = [], set()
            for path in paths:
                if len(path) < level:
                    continue
                prefix = tuple(path[:level])
                if prefix not in seen:
                    seen.add(prefix)
                    need.append(prefix)
            if not need:
                continue
            # Sort so consecutive grid steps revisit the same resident B block
            # (and secondarily the same A block) -> the pipeline skips the DMA.
            need.sort(key=lambda p: (base_index[p[-1]], prev_slot[p[:-1]]))
            ia = jnp.asarray([prev_slot[p[:-1]] for p in need], jnp.int32)
            ib = jnp.asarray([base_index[p[-1]] for p in need], jnp.int32)
            prev_slab = _gathered_compose(prev_slab, base_slab, ia, ib,
                                          tm=tm, tn=tn, tk=tk,
                                          acc_dtype=acc_dtype,
                                          vmem_limit=cfg['vmem_limit'])
            prev_slot = {p: i for i, p in enumerate(need)}

        # Slice to true node counts only once, at the very end.
        new_edges = {}
        for path in paths:
            src_type, dst_type = path[0][0], path[-1][2]
            rel = '+'.join(et[1] for et in path)
            if len(path) == 1:
                mat = base_slab[base_index[path[0]]]
            else:
                mat = prev_slab[prev_slot[tuple(path)]]
            new_edges[(src_type, rel, dst_type)] = (
                mat[:num_nodes_dict[src_type], :num_nodes_dict[dst_type]])
        return new_edges


if __name__ == "__main__":
    key = jax.random.PRNGKey(0)

    # Small heterogeneous graph (non-uniform node counts exercise padding).
    num_nodes_dict = {'paper': 128, 'author': 64, 'field': 96, 'affiliation': 32}

    all_edge_types = []
    for ets in SRC_DICT.values():
        for et in ets:
            if et not in all_edge_types:
                all_edge_types.append(et)

    # Random sparse adjacency per edge type (dense 0/1 float32 representation).
    adj_dict = {}
    for i, et in enumerate(all_edge_types):
        src, _, dst = et
        k = jax.random.fold_in(key, i)
        adj_dict[et] = jax.random.bernoulli(
            k, 0.05, (num_nodes_dict[src], num_nodes_dict[dst])
        ).astype(jnp.float32)

    module = KHopAugmentation(num_heads=4, num_layers=2, num_spatial_types=2,
                              key=jax.random.fold_in(key, 10_000))

    out = module.forward(adj_dict, num_nodes_dict)
    out = jax.block_until_ready(out)

    # Pure-JAX reference: per-hop boolean composition (spspmm pattern-only).
    def ref_compose_path(path):
        m = adj_dict[path[0]].astype(jnp.float32)
        for et in path[1:]:
            m = (jnp.dot(m, adj_dict[et].astype(jnp.float32)) > 0).astype(jnp.float32)
        return m

    paths = enumerate_meta_paths(list(num_nodes_dict.keys()),
                                 module.num_spatial_types)
    for path in paths:
        key_t = (path[0][0], '+'.join(et[1] for et in path), path[-1][2])
        got = np.asarray(out[key_t].astype(jnp.float32))
        want = np.asarray(ref_compose_path(path))
        np.testing.assert_array_equal(got, want)

    # Host-side glue: recover edge_index (2, E) for one composed relation,
    # matching the (row, col) format spspmm would return.
    some_key = next(iter(out))
    edge_index = np.stack(np.nonzero(np.asarray(out[some_key].astype(jnp.float32))))
    assert edge_index.shape[0] == 2

    print("KERNEL_OK")
</pallas_src>

<mosaic_0001>
module attributes {stable_mosaic.version = 11 : i64} {
  func.func @_compose_direct_kernel(%arg0: i32, %arg1: i32, %arg2: i32, %arg3: memref<46xi32, #tpu.memory_space<smem>>, %arg4: memref<46xi32, #tpu.memory_space<smem>>, %arg5: memref<1x128x128xbf16, #tpu.memory_space<vmem>>, %arg6: memref<1x128x128xbf16, #tpu.memory_space<vmem>>, %arg7: memref<1x128x128xbf16, #tpu.memory_space<vmem>>) attributes {dimension_semantics = [#tpu.dimension_semantics<parallel>, #tpu.dimension_semantics<parallel>, #tpu.dimension_semantics<parallel>], iteration_bounds = array<i64: 46, 1, 1>, scalar_prefetch = 2 : i64, scratch_operands = 0 : i64, tpu.core_type = #tpu.core_type<tc>, window_params = [{transform_indices = @transform_0, window_bounds = array<i64: 1, 128, 128>}, {transform_indices = @transform_1, window_bounds = array<i64: 1, 128, 128>}, {transform_indices = @transform_2, window_bounds = array<i64: 1, 128, 128>}]} {
    %c0 = arith.constant 0 : index
    %c0_0 = arith.constant 0 : index
    %c0_1 = arith.constant 0 : index
    %0 = vector.load %arg5[%c0, %c0_0, %c0_1] : memref<1x128x128xbf16, #tpu.memory_space<vmem>>, vector<1x128x128xbf16>
    %1 = vector.shape_cast %0 : vector<1x128x128xbf16> to vector<128x128xbf16>
    %c0_2 = arith.constant 0 : index
    %c0_3 = arith.constant 0 : index
    %c0_4 = arith.constant 0 : index
    %2 = vector.load %arg6[%c0_2, %c0_3, %c0_4] : memref<1x128x128xbf16, #tpu.memory_space<vmem>>, vector<1x128x128xbf16>
    %3 = vector.shape_cast %2 : vector<1x128x128xbf16> to vector<128x128xbf16>
    %cst = arith.constant dense<0.000000e+00> : vector<128x128xf32>
    %4 = tpu.matmul %1, %3, %cst {dimension_numbers = #tpu.dot_dimension_numbers<[1], [0], [0], [1], [0, 0, 1, 1], [], []>} : vector<128x128xbf16>, vector<128x128xbf16>, vector<128x128xf32> -> vector<128x128xf32>
    %cst_5 = arith.constant 0.000000e+00 : f32
    %5 = vector.broadcast %cst_5 : f32 to vector<128x128xf32>
    %6 = arith.cmpf ogt, %4, %5 : vector<128x128xf32>
    %7 = arith.extui %6 : vector<128x128xi1> to vector<128x128xi32>
    %8 = arith.sitofp %7 : vector<128x128xi32> to vector<128x128xf32>
    %9 = arith.truncf %8 : vector<128x128xf32> to vector<128x128xbf16>
    %c0_6 = arith.constant 0 : index
    %c0_7 = arith.constant 0 : index
    %c0_8 = arith.constant 0 : index
    %10 = vector.load %arg7[%c0_6, %c0_7, %c0_8] : memref<1x128x128xbf16, #tpu.memory_space<vmem>>, vector<1x128x128xbf16>
    %11 = vector.shape_cast %10 : vector<1x128x128xbf16> to vector<128x128xbf16>
    %12 = vector.shape_cast %9 : vector<128x128xbf16> to vector<1x128x128xbf16>
    tpu.vector_store %arg7[%c0_6, %c0_7, %c0_8], %12 {strides = array<i32>} : memref<1x128x128xbf16, #tpu.memory_space<vmem>>, vector<1x128x128xbf16>,
    return
  }
  func.func @transform_0(%arg0: i32, %arg1: i32, %arg2: i32, %arg3: memref<46xi32, #tpu.memory_space<smem>>, %arg4: memref<46xi32, #tpu.memory_space<smem>>) -> (i32, i32, i32) {
    %0 = arith.index_cast %arg0 : i32 to index
    %1 = memref.load %arg3[%0] : memref<46xi32, #tpu.memory_space<smem>>
    %c0_i32 = arith.constant 0 : i32
    %c0_i32_0 = arith.constant 0 : i32
    return %1, %arg1, %c0_i32 : i32, i32, i32
  }
  func.func @transform_1(%arg0: i32, %arg1: i32, %arg2: i32, %arg3: memref<46xi32, #tpu.memory_space<smem>>, %arg4: memref<46xi32, #tpu.memory_space<smem>>) -> (i32, i32, i32) {
    %0 = arith.index_cast %arg0 : i32 to index
    %1 = memref.load %arg4[%0] : memref<46xi32, #tpu.memory_space<smem>>
    %c0_i32 = arith.constant 0 : i32
    %c0_i32_0 = arith.constant 0 : i32
    return %1, %c0_i32, %arg2 : i32, i32, i32
  }
  func.func @transform_2(%arg0: i32, %arg1: i32, %arg2: i32, %arg3: memref<46xi32, #tpu.memory_space<smem>>, %arg4: memref<46xi32, #tpu.memory_space<smem>>) -> (i32, i32, i32) {
    %c0_i32 = arith.constant 0 : i32
    return %arg0, %arg1, %arg2 : i32, i32, i32
  }
}

</mosaic_0001>

<bundles_post_ra>
// kernel: _gathered_compose.1
= control target key start
LH: loop header
LB: loop body
LE: loop exit
PB: predicated region body
PF: predicated region fallthrough
CT: control target
= control target key end

     0   :  { %s1705_s0 = inlined_call_operand.hbm [shape: s32[46], index: 0, kind: input, shape index: {}]   ;;  %s1706_s2 = inlined_call_operand.hbm [shape: bf16[12,128,128], index: 2, kind: input, shape index: {}]   ;;  %s1707_s3 = inlined_call_operand.hbm [shape: bf16[12,128,128], index: 3, kind: input, shape index: {}]   ;;  %s1708_s4 = inlined_call_operand.hbm [shape: bf16[46,128,128], index: 4, kind: output, shape index: {}]   ;;  %s1709_s1 = inlined_call_operand.hbm [shape: s32[46], index: 1, kind: input, shape index: {}]  }
   0x1   :  { %1718 = sst [smem:[#allocation24_spill]] %s1706_s2  ;;  %s1064_s17 = scalar_lea.hbm %s1705_s0, 16 }
   0x2   :  { %p1065_p0 = scmp.ne.s32.totalorder %s1705_s0, %s1064_s17  ;;  %p1068_p1 = scmp.lt.u32.totalorder %s1064_s17, %s1705_s0 }
   0x4   :  { %p1070_p2 = pnand %p1068_p1, %p1065_p0 }
   0x6   :  { %1073 = shalt.err (!%p1070_p2)  }
   0x7   :  { %s1282_s22 = smov [#allocation3]   ;;  %s1074_s27 = scalar_lea.hbm %s1709_s1, 16 }
   0x8   :  { %10 = dma.hbm_to_smem %s1705_s0, 16, %s1282_s22, [#allocation2] }
   0x9   :  { %p1075_p3 = scmp.ne.s32.totalorder %s1709_s1, %s1074_s27  ;;  %p1078_p4 = scmp.lt.u32.totalorder %s1074_s27, %s1709_s1 }
   0xb   :  { %p1080_p5 = pnand %p1078_p4, %p1075_p3 }
   0xd   :  { %1083 = shalt.err (!%p1080_p5)  }
   0xe   :  { %s1283_s6 = smov [#allocation4]  }
   0xf   :  { %12 = dma.hbm_to_smem %s1709_s1, 16, %s1283_s6, [#allocation2] }
  0x10   :  { %1220 = dma.done.wait [#allocation2], 32 }
  0x11   :  { %1221 = vsyncadd [#allocation2], 4294967264 }
  0x12   :  { %14 = sfence }
  0x13   :  { %15 = vsyncpa [#allocation6], 0 }
  0x14   :  { %17 = vsyncpa [#allocation6 + $0x1], 0 }
  0x15   :  { %18 = vsyncpa [#allocation9], 0 }
  0x16   :  { %20 = vsyncpa [#allocation9 + $0x1], 0 }
  0x17   :  { %21 = vsyncpa [#allocation7], 0 }
  0x18   :  { %23 = vsyncpa [#allocation7 + $0x1], 0  ;;  %s1341_s0 = smov 0   ;;  %s1343_s9 = smov 0  }
  0x19   :  { %s1345_s10 = smov 0   ;;  %s1347_s11 = smov 0  }
  0x1a   :  { %s1349_s12 = smov 0   ;;  %s1351_s1 = smov 0  }
  0x1b   :  { %s1353_s13 = smov 0   ;;  %s1355_s14 = smov 0  }
  0x1c   :  { %s1357_s15 = smov 0   ;;  %s1359_s16 = smov 0  }
  0x1d   :  { %s1361_s17 = smov 0   ;;  %s1363_s18 = smov 0  }
  0x1e LB: > { %1719 = sst [smem:[#allocation19_spill]] %s1244_s10  ;;  %s737_s19 = sadd.s32 4294967295, %s1280_s18   ;;  %s1280_s18 = sphi %s1363_s18, %s29_s18   ;;  %s1276_s17 = sphi %s1361_s17, %s1756_s17   ;;  %s1272_s16 = sphi %s1359_s16, %s1755_s16   ;;  %s1268_s15 = sphi %s1357_s15, %s1746_s15   ;;  %s1264_s14 = sphi %s1355_s14, %s1754_s14   ;;  %s1260_s13 = sphi %s1353_s13, %s1753_s13   ;;  %s1256_s1 = sphi %s1351_s1, %s1752_s1   ;;  %s1252_s12 = sphi %s1349_s12, %s1751_s12   ;;  %s1248_s11 = sphi %s1347_s11, %s1750_s11   ;;  %s1244_s10 = sphi %s1345_s10, %s1744_s10   ;;  %s1240_s9 = sphi %s1343_s9, %s1749_s9   ;;  %s1236_s0 = sphi %s1341_s0, %s1748_s0  }
  0x1f   : > { %1720 = sst [smem:[#allocation20_spill]] %s1268_s15  ;;  %s738_s20 = sadd.s32 4294967294, %s1280_s18  }
  0x20   : > { %s48_s21 = sadd.s32 1, %s1276_s17  ;;  %s52_s22 = sld [smem:[#allocation3 + %s1276_s17]] }
  0x21   : > { %p50_p6 = scmp.ge.s32.totalorder %s48_s21, 46  ;;  %s59_s23 = sadd.s32 1, %s1268_s15 }
  0x22   : > { %p66_p7 = scmp.ne.s32.totalorder %s1268_s15, %s1264_s14  ;;  %p1713_p8 = scmp.eq.s32.totalorder %s1280_s18, 0 }
  0x23   : > { %s1758_s21 = smov (%p50_p6, %s48_s21), 0  ;;  %p72_p10 = scmp.ne.s32.totalorder %s1264_s14, %s1260_s13 }
  0x24   : > { %1721 = sst [smem:[#allocation21_spill]] %s1758_s21  ;;  %p1411_p9 = por %p1713_p8, %p66_p7 }
  0x25   : > { %s53_s25 = sld [smem:[#allocation3 + %s1758_s21]]  ;;  %p1417_p11 = scmp.eq.s32.totalorder %s737_s19, 0 }
  0x26   : > { %s112_s27 = ssub.s32 %s1276_s17, %s1758_s21  ;;  %s119_s28 = sadd.s32 1, %s1244_s10 }
  0x27   : > { %p1426_p12 = por %p1417_p11, %p72_p10  ;;  %p117_p13 = scmp.eq.s32.totalorder %s112_s27, 0 }
  0x28   : > { %p129_p0 = scmp.ne.s32.totalorder %s1244_s10, %s1240_s9  ;;  %p130_p1 = scmp.eq.s32.totalorder %s737_s19, 45 }
  0x29   : > { %s1724_s29 = scalar_select %p1426_p12, 1, 0 }
  0x2a   : > { %s1433_s30 = scalar_select %p117_p13, %s1244_s10, %s119_s28  }
  0x2b   : > { %p1435_p2 = por %p130_p1, %p129_p0  ;;  %p135_p3 = scmp.ne.s32.totalorder %s1240_s9, %s1236_s0 }
  0x2c   : > { %1725 = sst [smem:[#allocation22_spill]] %s1433_s30  ;;  %s54_s6 = ssub.s32 %s52_s22, %s53_s25 }
  0x2d   : > { %s1726_s5 = scalar_select %p1435_p2, 1, 0 }
  0x2e   : > { %p136_p4 = scmp.eq.s32.totalorder %s738_s20, 45  ;;  %p57_p5 = scmp.eq.s32.totalorder %s54_s6, 0 }
  0x2f   : > { %p1712_p7 = scmp.lt.s32.totalorder %s1280_s18, 46  ;;  %s156_s13 = sand.u32 1, %s1268_s15  }
  0x30   : > { %p1441_p6 = por %p136_p4, %p135_p3  ;;  %s741_s20 = sshll.u32 %s156_s13, 6 }
  0x31   : > { %s1447_s8 = scalar_select %p57_p5, %s1268_s15, %s59_s23  }
  0x32   : > { %s1727_s7 = scalar_select %p1441_p6, 1, 0 }
  0x33   : > { %1728 = sst [smem:[#allocation23_spill]] %s1447_s8  ;;  %p1454_p10 = pnand %p1712_p7, %p1411_p9 }
  0x34   : > { %s918_s22 = scalar_select %p1411_p9, [#allocation3], [#allocation11] }
  0x35   : > { %s919_s25 = scalar_select %p1411_p9, %s1276_s17, 0 }
  0x36   : > { %s1760_s22 = smov (!%p1712_p7, %s918_s22), [#allocation13]  ;;  %s160_s23 = scalar_lea.vmem [#allocation5], %s741_s20 }
  0x37   : > { %s1762_s25 = smov (!%p1712_p7, %s919_s25), 0  ;;  %s170_s27 = sshll.u32 %s160_s23, 4  ;;  %s1467_s27 = int_to_ptr.vmem [resolvable:$true] %s170_s27 }
  0x38   : > { %s161_s28 = sld [smem:[%s1760_s22 + %s1762_s25]]  ;;  %p747_p13 = scmp.ge.s32.totalorder %s1280_s18, 1 }
  0x39   : > { %p201_p0 = scmp.lt.s32.totalorder %s1280_s18, 47  ;;  %s1476_s24 = sld [smem:[#allocation4 + %s1276_s17]] }
  0x3a   : > { %s1731_s2 = sld [smem:[#allocation24_spill]]  ;;  %s1486_s22 = scalar_lea.sflag [#allocation6], %s156_s13 }
  0x3b   : > { %p1471_p1 = pnand %p747_p13, %p201_p0  ;;  %s1484_s20 = sld [smem:[#allocation4 + %s1758_s21]] }
  0x3c   : > { %p1086_p3 = pneg %p1454_p10 }
  0x3d   : > { %s1730_s6 = scalar_select %p1471_p1, 1, 0 }
  0x3e   : > { %s804_s8 = sshll.u32 %s161_s28, 10 }
  0x40   : > { %s1481_s10 = scalar_lea.hbm %s1731_s2, %s804_s8  ;;  %s1089_s30 = scalar_lea.hbm %s1731_s2, 12288 }
  0x41   : > { %s1084_s25 = scalar_lea.hbm %s1481_s10, 1024  ;;  %p1090_p13 = scmp.lt.u32.totalorder %s1481_s10, %s1731_s2 }
  0x42   : > { %p1085_p9 = scmp.ne.s32.totalorder %s1481_s10, %s1084_s25  ;;  %p1091_p0 = scmp.lt.u32.totalorder %s1089_s30, %s1084_s25 }
  0x43   : > { %p1093_p8 = scmp.lt.u32.totalorder %s1084_s25, %s1481_s10 }
  0x44   : > { %p1087_p4 = pnand %p1086_p3, %p1085_p9  ;;  %p1092_p7 = por %p1091_p0, %p1090_p13 }
  0x46   : > { %p1088_p5 = pneg %p1087_p4  ;;  %p1094_p6 = por %p1093_p8, %p1092_p7 }
  0x48   : > { %p1095_p2 = pnand %p1094_p6, %p1088_p5 }
  0x4a   : > { %1098 = shalt.err (!%p1095_p2)
}
  0x4b   : > { %s1099_s13 = scalar_lea.vmem %s1467_s27, 1024  ;;  %s1284_s23 = smov [#allocation5]  }
  0x4c   : > { %p1100_p9 = scmp.ne.s32.totalorder %s1467_s27, %s1099_s13  ;;  %s1104_s15 = sshll.u32 %s1284_s23, 4  ;;  %s1105_s15 = int_to_ptr.vmem [resolvable:$false] %s1104_s15 }
  0x4d   : > { %s1106_s8 = scalar_lea.vmem %s1105_s15, 2048  ;;  %p1107_p1 = scmp.lt.s32.totalorder %s1467_s27, %s1105_s15 }
  0x4e   : > { %p1102_p4 = pnand %p1100_p9, %p1086_p3  ;;  %p1108_p13 = scmp.lt.s32.totalorder %s1106_s8, %s1099_s13 }
  0x50   : > { %p1103_p12 = pneg %p1102_p4  ;;  %p1109_p0 = por %p1108_p13, %p1107_p1 }
  0x52   : > { %p1110_p8 = pnand %p1109_p0, %p1103_p12 }
  0x54   : > { %1113 = shalt.err (!%p1110_p8)
}
  0x55   : > { %s1717_s25 = smov 64   ;;  %s1286_s30 = smov 4  }
  0x56   : > { %933 = dma.hbm_to_vmem [thread:$0]  (!%p1454_p10), %s1481_s10, 1024, %s1467_s27, %s1486_s22, %s1717_s25, %s1717_s25, %s1286_s30  }
  0x57   : > { %p96_p12 = scmp.ne.s32.totalorder %s1256_s1, %s1252_s12  ;;  %p102_p2 = scmp.ne.s32.totalorder %s1252_s12, %s1248_s11 }
  0x58   : > { %p1732_p6 = scmp.eq.s32.totalorder %s1280_s18, 0  ;;  %s180_s28 = sand.u32 1, %s1256_s1  }
  0x59   : > { %p1526_p1 = por %p102_p2, %p1417_p11  ;;  %s84_s23 = ssub.s32 %s1476_s24, %s1484_s20 }
  0x5a   : > { %p98_p7 = por %p96_p12, %p1732_p6  ;;  %s89_s15 = sadd.s32 1, %s1256_s1 }
  0x5b   : > { %p87_p3 = scmp.eq.s32.totalorder %s84_s23, 0  ;;  %s744_s8 = sshll.u32 %s180_s28, 6 }
  0x5c   : > { %s921_s19 = scalar_select %p98_p7, [#allocation4], [#allocation12] }
  0x5d   : > { %s1534_s2 = scalar_select %p87_p3, %s1256_s1, %s89_s15  }
  0x5e   : > { %s922_s21 = scalar_select %p98_p7, %s1276_s17, 0 }
  0x5f   : > { %p1734_p5 = scmp.lt.s32.totalorder %s1280_s18, 46  ;;  %s184_s26 = scalar_lea.vmem [#allocation8], %s744_s8 }
  0x60   : > { %s193_s27 = sshll.u32 %s184_s26, 4  ;;  %s1554_s15 = scalar_lea.sflag [#allocation9], %s180_s28  ;;  %s1547_s27 = int_to_ptr.vmem [resolvable:$true] %s193_s27 }
  0x61   : > { %s1764_s19 = smov (!%p1734_p5, %s921_s19), [#allocation14]  ;;  %p1735_p10 = pmov %p1734_p5 }
  0x62   : > { %p1736_p9 = pmov %p1734_p5 }
  0x63   : > { %s1766_s21 = smov (!%p1735_p10, %s922_s21), 0 }
  0x64   : > { %p1543_p4 = pnand %p1736_p9, %p98_p7  ;;  %s185_s11 = sld [smem:[%s1764_s19 + %s1766_s21]] }
  0x65   : > { %s1119_s19 = scalar_lea.hbm %s1707_s3, 12288 }
  0x66   : > { %p1116_p13 = pneg %p1543_p4 }
  0x6a   : > { %s805_s24 = sshll.u32 %s185_s11, 10 }
  0x6b   : > { %s1552_s23 = scalar_lea.hbm %s1707_s3, %s805_s24 }
  0x6c   : > { %s1114_s25 = scalar_lea.hbm %s1552_s23, 1024  ;;  %p1120_p12 = scmp.lt.u32.totalorder %s1552_s23, %s1707_s3 }
  0x6d   : > { %p1115_p11 = scmp.ne.s32.totalorder %s1552_s23, %s1114_s25  ;;  %p1121_p2 = scmp.lt.u32.totalorder %s1119_s19, %s1114_s25 }
  0x6e   : > { %p1123_p7 = scmp.lt.u32.totalorder %s1114_s25, %s1552_s23 }
  0x6f   : > { %p1117_p0 = pnand %p1116_p13, %p1115_p11  ;;  %p1122_p6 = por %p1121_p2, %p1120_p12 }
  0x71   : > { %p1118_p8 = pneg %p1117_p0  ;;  %p1124_p3 = por %p1123_p7, %p1122_p6 }
  0x73   : > { %p1125_p5 = pnand %p1124_p3, %p1118_p8 }
  0x75   : > { %1128 = shalt.err (!%p1125_p5)
}
  0x76   : > { %s1129_s28 = scalar_lea.vmem %s1547_s27, 1024  ;;  %s1287_s24 = smov [#allocation8]  }
  0x77   : > { %p1130_p10 = scmp.ne.s32.totalorder %s1547_s27, %s1129_s28  ;;  %s1134_s20 = sshll.u32 %s1287_s24, 4  ;;  %s1135_s20 = int_to_ptr.vmem [resolvable:$false] %s1134_s20 }
  0x78   : > { %s1136_s22 = scalar_lea.vmem %s1135_s20, 2048  ;;  %p1137_p0 = scmp.lt.s32.totalorder %s1547_s27, %s1135_s20 }
  0x79   : > { %p1132_p9 = pnand %p1130_p10, %p1116_p13  ;;  %p1138_p12 = scmp.lt.s32.totalorder %s1136_s22, %s1129_s28 }
  0x7b   : > { %p1133_p11 = pneg %p1132_p9  ;;  %p1139_p2 = por %p1138_p12, %p1137_p0 }
  0x7d   : > { %p1140_p6 = pnand %p1139_p2, %p1133_p11 }
  0x7f   : > { %1143 = shalt.err (!%p1140_p6)
}
  0x80   : > { %s1738_s25 = smov 64   ;;  %p1739_p13 = scmp.ne.s32.totalorder %s1730_s6, 0 }
  0x81   : > { %938 = dma.hbm_to_vmem [thread:$0]  (!%p1543_p4), %s1552_s23, 1024, %s1547_s27, %s1554_s15, %s1738_s25, %s1738_s25, %s1286_s30  }
  0x82   : > { %205 = sbr.rel (%p1739_p13) target bundleno = 417 (0x1a1), region = 28  ;;  %s207_s21 = sand.u32 (!%p1739_p13), 1, %s1264_s14  }
  0x83   : > { %s748_s8 = sshll.u32 (!%p1739_p13), %s207_s21, 6  ;;  %s208_s19 = scalar_lea.sflag (!%p1739_p13), [#allocation6], %s207_s21 }
  0x84   : > { %s1588_s11 = scalar_lea.vmem (!%p1739_p13), [#allocation5], %s748_s8  ;;  %p1740_p8 = scmp.ne.s32.totalorder (!%p1739_p13), %s1724_s29, 0 }
  0x89   : > { %1223 = dma.done.wait (%p1740_p8), %s208_s19, 1024  }
  0x8a   : > { %1225 = vsyncadd (%p1740_p8), %s208_s19, 4294966272  ;;  %s216_s10 = sand.u32 1, %s1252_s12  }
  0x8b   : > { %s749_s26 = sshll.u32 %s216_s10, 6  ;;  %s217_s30 = scalar_lea.sflag [#allocation9], %s216_s10 }
  0x8c   : > { %s1595_s27 = scalar_lea.vmem [#allocation8], %s749_s26 }
  0x8d   : > { %1227 = dma.done.wait (%p1526_p1), %s217_s30, 1024  }
  0x8e   : > { %1229 = vsyncadd (%p1526_p1), %s217_s30, 4294966272  ;;  %v1048_v0 = vld [vmem:[%s1595_s27] sm:$0xff]   ;;  %v1049_v1 = vld [vmem:[%s1595_s27 + $0x8] sm:$0xff]   ;;  %s243_s29 = sand.u32 1, %s1240_s9   ;;  %v1288_v20 = vmov 0.0   ;;  %s822_s15 = sshll.u32 %s1272_s16, 10 }
  0x8f   : > { %870 = vmatprep.subr.bf16.mxu0 %v1048_v0  ;;  %902 = vmatprep.subr.bf16.mxu1 %v1048_v0  ;;  %v1050_v2 = vld [vmem:[%s1595_s27 + $0x10] sm:$0xff]   ;;  %v1051_v3 = vld [vmem:[%s1595_s27 + $0x18] sm:$0xff]   ;;  %v1056_v4 = vld [vmem:[%s1588_s11] sm:$0xff]   ;;  %s750_s6 = sshll.u32 %s243_s29, 6  ;;  %s1633_s24 = scalar_lea.hbm %s1708_s4, %s822_s15 }
  0x90   : > { %871 = vmatpush3.bf16.msra.mxu0 %v1048_v0  ;;  %910 = vmatpush3.bf16.msra.mxu1 %v1048_v0  ;;  %v1057_v5 = vld [vmem:[%s1588_s11 + $0x20] sm:$0xff]   ;;  %v1053_v7 = vld [vmem:[%s1595_s27 + $0x28] sm:$0xff]   ;;  %v1054_v8 = vld [vmem:[%s1595_s27 + $0x30] sm:$0xff]   ;;  %s1620_s13 = scalar_lea.vmem [#allocation10], %s750_s6  ;;  %s1641_s20 = scalar_lea.sflag [#allocation7], %s243_s29 }
  0x91   : > { %872 = vmatprep.subr.bf16.mxu0 %v1049_v1  ;;  %903 = vmatprep.subr.bf16.mxu1 %v1049_v1  ;;  %v1052_v6 = vld [vmem:[%s1595_s27 + $0x20] sm:$0xff]   ;;  %v1055_v9 = vld [vmem:[%s1595_s27 + $0x38] sm:$0xff]   ;;  %v1058_v10 = vld [vmem:[%s1588_s11 + $0x8] sm:$0xff]   ;;  %s621_s23 = sshll.u32 %s1620_s13, 4  ;;  %p1741_p4 = scmp.ne.s32.totalorder %s1726_s5, 0  ;;  %s1628_s23 = int_to_ptr.vmem [resolvable:$true] %s621_s23 }
  0x92   : > { %886 = vmatprep.mubr.bf16.mxu0 %v1056_v4  ;;  %894 = vmatprep.mubr.bf16.mxu1 %v1057_v5  ;;  %v1059_v11 = vld [vmem:[%s1588_s11 + $0x28] sm:$0xff]   ;;  %v1060_v12 = vld [vmem:[%s1588_s11 + $0x10] sm:$0xff]   ;;  %v1062_v14 = vld [vmem:[%s1588_s11 + $0x18] sm:$0xff]   ;;  %s1144_s22 = scalar_lea.vmem %s1628_s23, 1024  ;;  %s1289_s25 = smov [#allocation10]  }
  0x93   : > { %v1061_v13 = vld [vmem:[%s1588_s11 + $0x30] sm:$0xff]   ;;  %v1063_v15 = vld [vmem:[%s1588_s11 + $0x38] sm:$0xff]   ;;  %p1145_p1 = scmp.ne.s32.totalorder %s1628_s23, %s1144_s22  ;;  %s1148_s21 = sshll.u32 %s1289_s25, 4  ;;  %s1149_s21 = int_to_ptr.vmem [resolvable:$false] %s1148_s21 }
  0x94   : > { %873 = vmatpush3.bf16.msra.mxu0 %v1049_v1  ;;  %911 = vmatpush3.bf16.msra.mxu1 %v1049_v1  ;;  %s1150_s8 = scalar_lea.vmem %s1149_s21, 2048  ;;  %p1151_p5 = scmp.lt.s32.totalorder %s1628_s23, %s1149_s21 }
  0x95   : > { %874 = vmatprep.subr.bf16.mxu0 %v1050_v2  ;;  %904 = vmatprep.subr.bf16.mxu1 %v1050_v2  ;;  %p1146_p7 = pnand %p1145_p1, %p1741_p4  ;;  %p1152_p10 = scmp.lt.s32.totalorder %s1150_s8, %s1144_s22 }
  0x97   : > { %p1147_p3 = pneg %p1146_p7  ;;  %p1153_p9 = por %p1152_p10, %p1151_p5 }
  0x98   : > { %875 = vmatpush3.bf16.msra.mxu0 %v1050_v2  ;;  %912 = vmatpush3.bf16.msra.mxu1 %v1050_v2 }
  0x99   : > { %876 = vmatprep.subr.bf16.mxu0 %v1051_v3  ;;  %905 = vmatprep.subr.bf16.mxu1 %v1051_v3  ;;  %p1154_p11 = pnand %p1153_p9, %p1147_p3 }
  0x9c   : > { %877 = vmatpush3.bf16.msra.mxu0 %v1051_v3  ;;  %913 = vmatpush3.bf16.msra.mxu1 %v1051_v3 }
  0x9d   : > { %878 = vmatprep.subr.bf16.mxu0 %v1052_v6  ;;  %906 = vmatprep.subr.bf16.mxu1 %v1052_v6 }
  0xa0   : > { %879 = vmatpush3.bf16.msra.mxu0 %v1052_v6  ;;  %914 = vmatpush3.bf16.msra.mxu1 %v1052_v6 }
  0xa1   : > { %880 = vmatprep.subr.bf16.mxu0 %v1053_v7  ;;  %907 = vmatprep.subr.bf16.mxu1 %v1053_v7 }
  0xa4   : > { %881 = vmatpush3.bf16.msra.mxu0 %v1053_v7  ;;  %915 = vmatpush3.bf16.msra.mxu1 %v1053_v7 }
  0xa5   : > { %882 = vmatprep.subr.bf16.mxu0 %v1054_v8  ;;  %908 = vmatprep.subr.bf16.mxu1 %v1054_v8 }
  0xa8   : > { %883 = vmatpush3.bf16.msra.mxu0 %v1054_v8  ;;  %916 = vmatpush3.bf16.msra.mxu1 %v1054_v8 }
  0xa9   : > { %884 = vmatprep.subr.bf16.mxu0 %v1055_v9  ;;  %909 = vmatprep.subr.bf16.mxu1 %v1055_v9 }
  0xac   : > { %885 = vmatpush3.bf16.msra.mxu0 %v1055_v9  ;;  %917 = vmatpush3.bf16.msra.mxu1 %v1055_v9 }
  0xaf   : > { %887 = vmatmul.mubr.bf16.vlgmr.msra.gmra.mrb[0].mxu0 %v1058_v10  ;;  %895 = vmatmul.mubr.bf16.vlgmr.msra.gmra.mrb[0].mxu1 %v1059_v11 }
  0xb0   : > { %890 = vmatprep.mubr.bf16.mxu0 %v1060_v12  ;;  %898 = vmatprep.mubr.bf16.mxu1 %v1061_v13 }
  0xb7   : > { %891 = vmatmul.mubr.bf16.gmra.mrb[4].mxu0 %v1062_v14  ;;  %899 = vmatmul.mubr.bf16.gmra.mrb[4].mxu1 %v1063_v15 }
 0x182   : > { %v888_v16 = vpop.f32.mrb[0].mxu0  ;;  %v896_v17 = vpop.f32.mrb[0].mxu1 }
 0x183   : > { %vm478_vm0 = vcmp.gt.f32.partialorder %v888_v16, 0.0  ;;  %vm486_vm1 = vcmp.gt.f32.partialorder %v896_v17, 0.0  ;;  %v413_v18 = vpop.f32.mrb[1].mxu0  ;;  %v445_v19 = vpop.f32.mrb[1].mxu1 }
 0x184   : > { %v769_v21 = vsel %vm478_vm0, 1.0, %v1288_v20  ;;  %v777_v22 = vsel %vm486_vm1, 1.0, %v1288_v20  ;;  %vm476_vm2 = vcmp.gt.f32.partialorder %v413_v18, 0.0  ;;  %vm484_vm3 = vcmp.gt.f32.partialorder %v445_v19, 0.0  ;;  %v889_v23 = vpop.f32.mrb[2].mxu0  ;;  %v897_v24 = vpop.f32.mrb[2].mxu1 }
 0x185   : > { %v767_v25 = vsel %vm476_vm2, 1.0, %v1288_v20  ;;  %v775_v26 = vsel %vm484_vm3, 1.0, %v1288_v20  ;;  %vm479_vm4 = vcmp.gt.f32.partialorder %v889_v23, 0.0  ;;  %vm487_vm5 = vcmp.gt.f32.partialorder %v897_v24, 0.0  ;;  %v416_v27 = vpop.f32.mrb[3].mxu0  ;;  %v448_v28 = vpop.f32.mrb[3].mxu1 }
 0x186   : > { %v770_v29 = vsel %vm479_vm4, 1.0, %v1288_v20  ;;  %v778_v30 = vsel %vm487_vm5, 1.0, %v1288_v20  ;;  %vm477_vm6 = vcmp.gt.f32.partialorder %v416_v27, 0.0  ;;  %vm485_vm7 = vcmp.gt.f32.partialorder %v448_v28, 0.0 }
 0x187   : > { %v827_v31 = vpack.c.bf16 %v770_v29, %v769_v21  ;;  %v839_v32 = vpack.c.bf16 %v778_v30, %v777_v22  ;;  %v768_v33 = vsel %vm477_vm6, 1.0, %v1288_v20  ;;  %v776_v34 = vsel %vm485_vm7, 1.0, %v1288_v20 }
 0x188   : > { %v824_v35 = vpack.c.bf16 %v768_v33, %v767_v25  ;;  %v836_v36 = vpack.c.bf16 %v776_v34, %v775_v26 }
 0x189   : > { %847 = vst [vmem:[%s1620_s13 + $0x8] sm:$0xff] %v827_v31   ;;  %851 = vst [vmem:[%s1620_s13 + $0x28] sm:$0xff] %v839_v32  }
 0x18a   : > { %825 = vst [vmem:[%s1620_s13] sm:$0xff] %v824_v35   ;;  %850 = vst [vmem:[%s1620_s13 + $0x20] sm:$0xff] %v836_v36   ;;  %v892_v37 = vpop.f32.mrb[4].mxu0  ;;  %v900_v38 = vpop.f32.mrb[4].mxu1 }
 0x18b   : > { %vm482_vm8 = vcmp.gt.f32.partialorder %v892_v37, 0.0  ;;  %vm490_vm9 = vcmp.gt.f32.partialorder %v900_v38, 0.0  ;;  %v429_v39 = vpop.f32.mrb[5].mxu0  ;;  %v461_v40 = vpop.f32.mrb[5].mxu1 }
 0x18c   : > { %v773_v41 = vsel %vm482_vm8, 1.0, %v1288_v20  ;;  %v781_v42 = vsel %vm490_vm9, 1.0, %v1288_v20  ;;  %vm480_vm10 = vcmp.gt.f32.partialorder %v429_v39, 0.0  ;;  %vm488_vm11 = vcmp.gt.f32.partialorder %v461_v40, 0.0  ;;  %v893_v43 = vpop.f32.mrb[6].mxu0  ;;  %v901_v44 = vpop.f32.mrb[6].mxu1 }
 0x18d   : > { %v771_v45 = vsel %vm480_vm10, 1.0, %v1288_v20  ;;  %v779_v46 = vsel %vm488_vm11, 1.0, %v1288_v20  ;;  %vm483_vm12 = vcmp.gt.f32.partialorder %v893_v43, 0.0  ;;  %vm491_vm13 = vcmp.gt.f32.partialorder %v901_v44, 0.0  ;;  %v432_v47 = vpop.f32.mrb[7].mxu0  ;;  %v464_v48 = vpop.f32.mrb[7].mxu1 }
 0x18e   : > { %v774_v49 = vsel %vm483_vm12, 1.0, %v1288_v20  ;;  %v782_v50 = vsel %vm491_vm13, 1.0, %v1288_v20  ;;  %vm481_vm14 = vcmp.gt.f32.partialorder %v432_v47, 0.0  ;;  %vm489_vm15 = vcmp.gt.f32.partialorder %v464_v48, 0.0 }
 0x18f   : > { %v833_v51 = vpack.c.bf16 %v774_v49, %v773_v41  ;;  %v845_v52 = vpack.c.bf16 %v782_v50, %v781_v42  ;;  %v772_v53 = vsel %vm481_vm14, 1.0, %v1288_v20  ;;  %v780_v54 = vsel %vm489_vm15, 1.0, %v1288_v20 }
 0x190   : > { %v830_v55 = vpack.c.bf16 %v772_v53, %v771_v45  ;;  %v842_v56 = vpack.c.bf16 %v780_v54, %v779_v46 }
 0x191   : > { %849 = vst [vmem:[%s1620_s13 + $0x18] sm:$0xff] %v833_v51   ;;  %853 = vst [vmem:[%s1620_s13 + $0x38] sm:$0xff] %v845_v52  }
 0x192   : > { %848 = vst [vmem:[%s1620_s13 + $0x10] sm:$0xff] %v830_v55   ;;  %852 = vst [vmem:[%s1620_s13 + $0x30] sm:$0xff] %v842_v56  }
 0x193   : > { %1157 = shalt.err (!%p1154_p11)
}
 0x194   : > { %s1158_s19 = scalar_lea.hbm %s1633_s24, 1024  ;;  %s1162_s26 = scalar_lea.hbm %s1708_s4, 47104 }
 0x195   : > { %p1159_p0 = scmp.ne.s32.totalorder %s1633_s24, %s1158_s19  ;;  %p1163_p6 = scmp.lt.u32.totalorder %s1633_s24, %s1708_s4 }
 0x196   : > { %p1164_p13 = scmp.lt.u32.totalorder %s1162_s26, %s1158_s19  ;;  %p1166_p1 = scmp.lt.u32.totalorder %s1158_s19, %s1633_s24 }
 0x197   : > { %p1160_p12 = pnand %p1159_p0, %p1741_p4 }
 0x198   : > { %p1165_p8 = por %p1164_p13, %p1163_p6 }
 0x199   : > { %p1161_p2 = pneg %p1160_p12 }
 0x19a   : > { %p1167_p7 = por %p1166_p1, %p1165_p8 }
 0x19c   : > { %p1168_p3 = pnand %p1167_p7, %p1161_p2 }
 0x19e   : > { %1171 = shalt.err (!%p1168_p3)
}
 0x19f   : > { %s1290_s29 = smov 64   ;;  %s1291_s6 = smov 4  }
 0x1a0   : > { %926 = dma.vmem_to_hbm [thread:$0]  (%p1741_p4), %s1628_s23, 1024, %s1633_s24, %s1641_s20, %s1290_s29, %s1290_s29, %s1291_s6  }
 0x1a1 PF: > { %p944_p5 = scmp.ge.s32.totalorder %s1280_s18, 2  ;;  %s636_s13 = sand.u32 1, %s1236_s0  }
 0x1a2   : > { %p1742_p10 = scmp.ne.s32.totalorder %s1727_s7, 0  ;;  %s637_s15 = scalar_lea.sflag [#allocation7], %s636_s13 }
 0x1a4   : > { %p940_p9 = pnand %p944_p5, %p1742_p10 }
 0x1a6   : > { %1231 = dma.done.wait (!%p940_p9), %s637_s15, 1024  }
 0x1a7   : > { %1233 = vsyncadd (!%p940_p9), %s637_s15, 4294966272  ;;  %s29_s18 = sadd.s32 1, %s1280_s18   ;;  %s1743_s16 = sld [smem:[#allocation19_spill]] }
 0x1a8   : > { %p26_p11 = scmp.ge.s32.totalorder %s29_s18, 48   ;;  %s1744_s10 = sld [smem:[#allocation22_spill]] }
 0x1a9   : > { %s1745_s5 = sld [smem:[#allocation20_spill]]  ;;  %s1746_s15 = sld [smem:[#allocation23_spill]] }
 0x1aa   : > { %s1747_s23 = sld [smem:[#allocation21_spill]]  ;;  %s1748_s0 = smov %s1240_s9 }
 0x1ab   : > { %s1750_s11 = smov %s1252_s12  ;;  %s1751_s12 = smov %s1256_s1 }
 0x1ac   : > { %s1752_s1 = smov %s1534_s2  ;;  %s1753_s13 = smov %s1264_s14 }
 0x1ad   : > { %s1749_s9 = smov %s1743_s16  ;;  %s1755_s16 = smov %s1276_s17 }
 0x1ae   :  { %28 = sbr.rel (!%p26_p11) target bundleno = 30 (0x1e), region = 86 }
 0x1af   : > { %s1754_s14 = smov %s1745_s5 }
 0x1b0   : > { %s1756_s17 = smov %s1747_s23 }
 0x1b5   :  { %642 = vsyncpa [#allocation6], 1 }
 0x1b6   :  { %644 = vsyncpa [#allocation6 + $0x1], 1 }
 0x1b7   :  { %645 = vsyncpa [#allocation9], 1 }
 0x1b8   :  { %647 = vsyncpa [#allocation9 + $0x1], 1 }
 0x1b9   :  { %648 = vsyncpa [#allocation7], 1 }
 0x1ba   :  { %650 = vsyncpa [#allocation7 + $0x1], 1 }

</bundles_post_ra>
